<compile_context>
chip_gen: v7x
topology: tpu7x:2x2x1
jax: 0.10.0
libtpu: 0.0.40
codegen_flags: <defaults>
</compile_context>

<pallas_src>
import functools

import jax
import jax.numpy as jnp
from jax.experimental import pallas as pl
from jax.experimental.pallas import tpu as pltpu

H = 64          # LSTM hidden size fixed by the module (nn.LSTM(hidden_size=64))
GATE_ROWS = 3 * H   # packed gate rows: [i | o | g] (forget gate dropped, c0 == 0)
MAX_TB = 2048   # batch tile (lanes) for large-batch calls


def _round_up(n, m):
    return ((n + m - 1) // m) * m


# --------------------------------------------------------------------------- kernel
def _net_kernel(x_ref, wg_ref, w1_ref, w2_ref, b_ref, out_ref, *, nh_rows, na_rows):
    """One batch tile (batch on lanes) of the fused LSTM-step -> relu(fc1) -> fc2."""
    x = x_ref[...]                                   # (k_pad, tb)   f32, batch on lanes
    b = b_ref[...]                                   # (GATE_ROWS + nh_rows + na_rows, 1)

    # ---- single-step LSTM, h0 = c0 = 0 (forget gate dropped at pack time) ----
    gates = jnp.dot(wg_ref[...], x, preferred_element_type=jnp.float32) \
        + b[0:GATE_ROWS, :]                          # (192, tb): rows [i | o | g]
    i = jax.nn.sigmoid(gates[0:H, :])                # (64, tb)
    o = jax.nn.sigmoid(gates[H:2 * H, :])            # (64, tb)
    g = jnp.tanh(gates[2 * H:3 * H, :])              # (64, tb)
    h = o * jnp.tanh(i * g)                          # (64, tb)  h = sigmoid(o)*tanh(c)

    # ---- fc1 + relu (rows zero-padded to nh_rows; pad rows stay 0 after relu) ----
    h1 = jnp.dot(w1_ref[...], h, preferred_element_type=jnp.float32) \
        + b[GATE_ROWS:GATE_ROWS + nh_rows, :]
    h1 = jnp.maximum(h1, 0.0)                        # (nh_rows, tb)

    # ---- fc2 (rows zero-padded to na_rows; lane-dense (8, tb) output block) ----
    out = jnp.dot(w2_ref[...], h1, preferred_element_type=jnp.float32) \
        + b[GATE_ROWS + nh_rows:GATE_ROWS + nh_rows + na_rows, :]
    out_ref[...] = out.astype(out_ref.dtype)


# --------------------------------------------------------------------------- wrapper
def net_forward(x, packed):
    """x: (B, n_states) float; packed: dict from pack_params(). Returns (B, n_actions)."""
    B, n_states = x.shape
    k_pad = packed["k_pad"]
    nh_rows = packed["nh_rows"]
    na_rows = packed["na_rows"]
    n_actions = packed["n_actions"]
    btot = GATE_ROWS + nh_rows + na_rows

    # batch on lanes: features on sublanes, batch on lanes
    xt = x.astype(jnp.float32).T                     # (n_states, B)
    if k_pad != n_states:                            # zero-pad feature (sublane) dim only
        xt = jnp.pad(xt, ((0, k_pad - n_states), (0, 0)))

    # batch tiling: tiny batches run as one full-array block; B > 128 always gets >= 2
    # blocks so the "parallel" grid axis can use both v7x TensorCores.
    if B <= 128:
        tb = B
    else:
        tb = min(MAX_TB, _round_up(pl.cdiv(B, 2), 128))
    grid_b = pl.cdiv(B, tb)

    kernel = functools.partial(_net_kernel, nh_rows=nh_rows, na_rows=na_rows)

    out = pl.pallas_call(
        kernel,
        # lane dim padded to grid_b*tb so output blocks are never clipped; input's
        # partial last batch block is handled by Pallas (garbage columns are sliced off).
        out_shape=jax.ShapeDtypeStruct((na_rows, grid_b * tb), jnp.float32),
        grid=(grid_b,),
        in_specs=[
            pl.BlockSpec((k_pad, tb), lambda i: (0, i)),          # x tile (batch on lanes)
            pl.BlockSpec((GATE_ROWS, k_pad), lambda i: (0, 0)),   # gate weights (resident)
            pl.BlockSpec((nh_rows, H), lambda i: (0, 0)),         # fc1 weights  (resident)
            pl.BlockSpec((na_rows, nh_rows), lambda i: (0, 0)),   # fc2 weights  (resident)
            pl.BlockSpec((btot, 1), lambda i: (0, 0)),            # packed biases (resident)
        ],
        out_specs=pl.BlockSpec((na_rows, tb), lambda i: (0, i)),
        compiler_params=pltpu.CompilerParams(
            dimension_semantics=("parallel",)),                   # v7x: batch over 2 TCs
    )(xt, packed["w_gate"], packed["w1"], packed["w2"], packed["b_pack"])

    return out[:n_actions, :B].T


# --------------------------------------------------------------------------- params
def init_params(key, n_states, n_hidden, n_actions):
    """PyTorch-shaped parameters with PyTorch-style uniform init."""
    ks = jax.random.split(key, 8)

    def u(k, shape, fan_in):
        bound = 1.0 / jnp.sqrt(jnp.float32(fan_in))
        return jax.random.uniform(k, shape, jnp.float32, -bound, bound)

    return {
        "w_ih": u(ks[0], (4 * H, n_states), H),   # lstm.weight_ih_l0
        "b_ih": u(ks[1], (4 * H,), H),            # lstm.bias_ih_l0
        "b_hh": u(ks[2], (4 * H,), H),            # lstm.bias_hh_l0
        # lstm.weight_hh_l0 multiplies h0 == 0 -> never needed at runtime
        "w1": u(ks[3], (n_hidden, H), H),         # fc1.weight
        "b1": u(ks[4], (n_hidden,), H),           # fc1.bias
        "w2": u(ks[5], (n_actions, n_hidden), n_hidden),  # fc2.weight
        "b2": u(ks[6], (n_actions,), n_hidden),           # fc2.bias
    }


def pack_params(tp, n_states, n_hidden, n_actions):
    """Repack PyTorch-shaped params for the batch-on-lanes kernel (weights as LHS).

      w_gate (192, k_pad): rows [0:64)=W_i, [64:128)=W_o, [128:192)=W_g (forget dropped)
      w1     (nh_rows, 64), w2 (na_rows, nh_rows): zero row/col padded
      b_pack (192 + nh_rows + na_rows, 1): [b_i | b_o | b_g | b1 | b2] as a column
    """
    assert tp["w_ih"].shape[0] == 4 * H
    k_pad = _round_up(n_states, 8)
    nh_rows = _round_up(n_hidden, 8)
    na_rows = _round_up(n_actions, 8)

    wi, _wf, wg, wo = jnp.split(tp["w_ih"], 4, axis=0)          # each (H, n_states)
    bi, _bf, bg, bo = jnp.split(tp["b_ih"] + tp["b_hh"], 4)

    w_gate = jnp.zeros((GATE_ROWS, k_pad), jnp.float32)
    w_gate = w_gate.at[0:H, :n_states].set(wi)
    w_gate = w_gate.at[H:2 * H, :n_states].set(wo)
    w_gate = w_gate.at[2 * H:3 * H, :n_states].set(wg)

    w1p = jnp.zeros((nh_rows, H), jnp.float32).at[:n_hidden, :].set(tp["w1"])
    w2p = jnp.zeros((na_rows, nh_rows), jnp.float32).at[:n_actions, :n_hidden].set(tp["w2"])

    btot = GATE_ROWS + nh_rows + na_rows
    b_pack = jnp.zeros((btot, 1), jnp.float32)
    b_pack = b_pack.at[0:H, 0].set(bi)
    b_pack = b_pack.at[H:2 * H, 0].set(bo)
    b_pack = b_pack.at[2 * H:3 * H, 0].set(bg)
    b_pack = b_pack.at[GATE_ROWS:GATE_ROWS + n_hidden, 0].set(tp["b1"])
    b_pack = b_pack.at[GATE_ROWS + nh_rows:GATE_ROWS + nh_rows + n_actions, 0].set(tp["b2"])

    return {
        "w_gate": w_gate, "w1": w1p, "w2": w2p, "b_pack": b_pack,
        "k_pad": k_pad, "nh_rows": nh_rows, "na_rows": na_rows,
        "n_actions": n_actions,
    }


# --------------------------------------------------------------------------- reference
def _reference(x, tp):
    """Pure-JAX reference on the unpacked PyTorch-shaped params (full gate math)."""
    gates = x @ tp["w_ih"].T + (tp["b_ih"] + tp["b_hh"])
    i = jax.nn.sigmoid(gates[:, 0 * H:1 * H])
    f = jax.nn.sigmoid(gates[:, 1 * H:2 * H])
    g = jnp.tanh(gates[:, 2 * H:3 * H])
    o = jax.nn.sigmoid(gates[:, 3 * H:4 * H])
    c = f * 0.0 + i * g                      # c0 == 0
    h = o * jnp.tanh(c)
    h1 = jnp.maximum(h @ tp["w1"].T + tp["b1"], 0.0)
    return h1 @ tp["w2"].T + tp["b2"]


# --------------------------------------------------------------------------- main
if __name__ == "__main__":
    n_states, n_hidden, n_actions = 8, 32, 4

    key = jax.random.PRNGKey(0)
    kx, kb, kp = jax.random.split(key, 3)
    torch_like = init_params(kp, n_states, n_hidden, n_actions)
    packed = pack_params(torch_like, n_states, n_hidden, n_actions)

    # small batch (matches the module's per-step use): single full-array block
    x = jax.random.normal(kx, (2, n_states), jnp.float32)
    out = jax.block_until_ready(net_forward(x, packed))
    ref = _reference(x, torch_like)
    assert out.shape == (2, n_actions)
    assert jnp.allclose(out, ref, atol=2e-5, rtol=2e-5), "mismatch vs reference (B=2)"

    # larger batch: exercises the multi-block "parallel" grid + partial last block path
    xb = jax.random.normal(kb, (1000, n_states), jnp.float32)
    outb = jax.block_until_ready(net_forward(xb, packed))
    refb = _reference(xb, torch_like)
    assert outb.shape == (1000, n_actions)
    assert jnp.allclose(outb, refb, atol=1e-4, rtol=1e-4), "mismatch vs reference (B=1000)"

    print("KERNEL_OK")
</pallas_src>

<mosaic_0001>
module attributes {stable_mosaic.version = 11 : i64} {
  func.func @_net_kernel(%arg0: i32, %arg1: memref<8x2xf32, #tpu.memory_space<vmem>>, %arg2: memref<192x8xf32, #tpu.memory_space<vmem>>, %arg3: memref<32x64xf32, #tpu.memory_space<vmem>>, %arg4: memref<8x32xf32, #tpu.memory_space<vmem>>, %arg5: memref<232x1xf32, #tpu.memory_space<vmem>>, %arg6: memref<8x2xf32, #tpu.memory_space<vmem>>) attributes {dimension_semantics = [#tpu.dimension_semantics<parallel>], iteration_bounds = array<i64: 1>, scalar_prefetch = 0 : i64, scratch_operands = 0 : i64, tpu.core_type = #tpu.core_type<tc>, window_params = [{transform_indices = @transform_0, window_bounds = array<i64: 8, 2>}, {pipeline_mode = #tpu.pipeline_mode<synchronous>, transform_indices = @transform_1, window_bounds = array<i64: 192, 8>}, {pipeline_mode = #tpu.pipeline_mode<synchronous>, transform_indices = @transform_2, window_bounds = array<i64: 32, 64>}, {pipeline_mode = #tpu.pipeline_mode<synchronous>, transform_indices = @transform_3, window_bounds = array<i64: 8, 32>}, {pipeline_mode = #tpu.pipeline_mode<synchronous>, transform_indices = @transform_4, window_bounds = array<i64: 232, 1>}, {transform_indices = @transform_5, window_bounds = array<i64: 8, 2>}]} {
    %c0 = arith.constant 0 : index
    %c0_0 = arith.constant 0 : index
    %0 = vector.load %arg1[%c0, %c0_0] : memref<8x2xf32, #tpu.memory_space<vmem>>, vector<8x2xf32>
    %c0_1 = arith.constant 0 : index
    %c0_2 = arith.constant 0 : index
    %1 = vector.load %arg5[%c0_1, %c0_2] : memref<232x1xf32, #tpu.memory_space<vmem>>, vector<232x1xf32>
    %c0_3 = arith.constant 0 : index
    %c0_4 = arith.constant 0 : index
    %2 = vector.load %arg2[%c0_3, %c0_4] : memref<192x8xf32, #tpu.memory_space<vmem>>, vector<192x8xf32>
    %cst = arith.constant dense<0.000000e+00> : vector<192x2xf32>
    %3 = tpu.matmul %2, %0, %cst {dimension_numbers = #tpu.dot_dimension_numbers<[1], [0], [0], [1], [0, 0, 1, 1], [], []>} : vector<192x8xf32>, vector<8x2xf32>, vector<192x2xf32> -> vector<192x2xf32>
    %4 = vector.extract_strided_slice %1 {offsets = [0, 0], sizes = [192, 1], strides = [1, 1]} : vector<232x1xf32> to vector<192x1xf32>
    %5 = vector.broadcast %4 : vector<192x1xf32> to vector<192x2xf32>
    %6 = arith.addf %3, %5 : vector<192x2xf32>
    %7 = vector.extract_strided_slice %6 {offsets = [0, 0], sizes = [64, 2], strides = [1, 1]} : vector<192x2xf32> to vector<64x2xf32>
    %8 = arith.negf %7 : vector<64x2xf32>
    %9 = math.exp %8 : vector<64x2xf32>
    %cst_5 = arith.constant 1.000000e+00 : f32
    %10 = vector.broadcast %cst_5 : f32 to vector<64x2xf32>
    %11 = arith.addf %10, %9 : vector<64x2xf32>
    %12 = arith.divf %10, %11 : vector<64x2xf32>
    %13 = vector.extract_strided_slice %6 {offsets = [64, 0], sizes = [64, 2], strides = [1, 1]} : vector<192x2xf32> to vector<64x2xf32>
    %14 = arith.negf %13 : vector<64x2xf32>
    %15 = math.exp %14 : vector<64x2xf32>
    %cst_6 = arith.constant 1.000000e+00 : f32
    %16 = vector.broadcast %cst_6 : f32 to vector<64x2xf32>
    %17 = arith.addf %16, %15 : vector<64x2xf32>
    %18 = arith.divf %16, %17 : vector<64x2xf32>
    %19 = vector.extract_strided_slice %6 {offsets = [128, 0], sizes = [64, 2], strides = [1, 1]} : vector<192x2xf32> to vector<64x2xf32>
    %20 = math.tanh %19 : vector<64x2xf32>
    %21 = arith.mulf %12, %20 : vector<64x2xf32>
    %22 = math.tanh %21 : vector<64x2xf32>
    %23 = arith.mulf %18, %22 : vector<64x2xf32>
    %c0_7 = arith.constant 0 : index
    %c0_8 = arith.constant 0 : index
    %24 = vector.load %arg3[%c0_7, %c0_8] : memref<32x64xf32, #tpu.memory_space<vmem>>, vector<32x64xf32>
    %cst_9 = arith.constant dense<0.000000e+00> : vector<32x2xf32>
    %25 = tpu.matmul %24, %23, %cst_9 {dimension_numbers = #tpu.dot_dimension_numbers<[1], [0], [0], [1], [0, 0, 1, 1], [], []>} : vector<32x64xf32>, vector<64x2xf32>, vector<32x2xf32> -> vector<32x2xf32>
    %26 = vector.extract_strided_slice %1 {offsets = [192, 0], sizes = [32, 1], strides = [1, 1]} : vector<232x1xf32> to vector<32x1xf32>
    %27 = vector.broadcast %26 : vector<32x1xf32> to vector<32x2xf32>
    %28 = arith.addf %25, %27 : vector<32x2xf32>
    %cst_10 = arith.constant 0.000000e+00 : f32
    %29 = vector.broadcast %cst_10 : f32 to vector<32x2xf32>
    %30 = arith.maximumf %28, %29 : vector<32x2xf32>
    %c0_11 = arith.constant 0 : index
    %c0_12 = arith.constant 0 : index
    %31 = vector.load %arg4[%c0_11, %c0_12] : memref<8x32xf32, #tpu.memory_space<vmem>>, vector<8x32xf32>
    %cst_13 = arith.constant dense<0.000000e+00> : vector<8x2xf32>
    %32 = tpu.matmul %31, %30, %cst_13 {dimension_numbers = #tpu.dot_dimension_numbers<[1], [0], [0], [1], [0, 0, 1, 1], [], []>} : vector<8x32xf32>, vector<32x2xf32>, vector<8x2xf32> -> vector<8x2xf32>
    %33 = vector.extract_strided_slice %1 {offsets = [224, 0], sizes = [8, 1], strides = [1, 1]} : vector<232x1xf32> to vector<8x1xf32>
    %34 = vector.broadcast %33 : vector<8x1xf32> to vector<8x2xf32>
    %35 = arith.addf %32, %34 : vector<8x2xf32>
    %c0_14 = arith.constant 0 : index
    %c0_15 = arith.constant 0 : index
    %36 = vector.load %arg6[%c0_14, %c0_15] : memref<8x2xf32, #tpu.memory_space<vmem>>, vector<8x2xf32>
    tpu.vector_store %arg6[%c0_14, %c0_15], %35 {strides = array<i32>} : memref<8x2xf32, #tpu.memory_space<vmem>>, vector<8x2xf32>,
    return
  }
  func.func @transform_0(%arg0: i32) -> (i32, i32) {
    %c0_i32 = arith.constant 0 : i32
    %c0_i32_0 = arith.constant 0 : i32
    return %c0_i32, %arg0 : i32, i32
  }
  func.func @transform_1(%arg0: i32) -> (i32, i32) {
    %c0_i32 = arith.constant 0 : i32
    %c0_i32_0 = arith.constant 0 : i32
    %c0_i32_1 = arith.constant 0 : i32
    return %c0_i32, %c0_i32_0 : i32, i32
  }
  func.func @transform_2(%arg0: i32) -> (i32, i32) {
    %c0_i32 = arith.constant 0 : i32
    %c0_i32_0 = arith.constant 0 : i32
    %c0_i32_1 = arith.constant 0 : i32
    return %c0_i32, %c0_i32_0 : i32, i32
  }
  func.func @transform_3(%arg0: i32) -> (i32, i32) {
    %c0_i32 = arith.constant 0 : i32
    %c0_i32_0 = arith.constant 0 : i32
    %c0_i32_1 = arith.constant 0 : i32
    return %c0_i32, %c0_i32_0 : i32, i32
  }
  func.func @transform_4(%arg0: i32) -> (i32, i32) {
    %c0_i32 = arith.constant 0 : i32
    %c0_i32_0 = arith.constant 0 : i32
    %c0_i32_1 = arith.constant 0 : i32
    return %c0_i32, %c0_i32_0 : i32, i32
  }
  func.func @transform_5(%arg0: i32) -> (i32, i32) {
    %c0_i32 = arith.constant 0 : i32
    %c0_i32_0 = arith.constant 0 : i32
    return %c0_i32, %arg0 : i32, i32
  }
}

</mosaic_0001>

<bundles_post_ra>
// kernel: tpu_custom_call.1
= control target key start
LH: loop header
LB: loop body
LE: loop exit
PB: predicated region body
PF: predicated region fallthrough
CT: control target
= control target key end

     0   :  { %vm194_vm0 = vcmask 64512   ;;  %v1076_v3 = vmov 0   ;;  %vm604_vm1 = vcmask 523264   ;;  %vm1078_vm2 = vmmov 0   ;;  %s1342_s0 = inlined_call_operand.vmem [shape: f32[8,2], index: 0, kind: input, shape index: {}]   ;;  %s1343_s1 = inlined_call_operand.vmem [shape: f32[192,8], index: 1, kind: input, shape index: {}]   ;;  %s1344_s4 = inlined_call_operand.vmem [shape: f32[232,1], index: 4, kind: input, shape index: {}]   ;;  %s1345_s2 = inlined_call_operand.vmem [shape: f32[32,64], index: 2, kind: input, shape index: {}]   ;;  %s1346_s3 = inlined_call_operand.vmem [shape: f32[8,32], index: 3, kind: input, shape index: {}]   ;;  %s1347_s5 = inlined_call_operand.vmem [shape: f32[8,2], index: 5, kind: output, shape index: {}]  }
   0x1   :  { %v20_v0 = vld [vmem:[%s1342_s0] sm:$0xff]  ;;  %978 = vset.pattern.permute.xlu0 %v1076_v3  ;;  %979 = vset.pattern.permute.xlu1 %v1076_v3  ;;  %v51_v4 = vld [vmem:[%s1343_s1 + $0x8] sm:$0xff]  ;;  %v52_v6 = vld [vmem:[%s1343_s1 + $0x10] sm:$0xff]  ;;  %vm712_vm3 = vcmask 261120   ;;  %vm786_vm4 = vcmask 15360  }
   0x2   :  { %v50_v1 = vld [vmem:[%s1343_s1] sm:$0xff]  ;;  %879 = vmatprep.subr.mxu0 %v20_v0  ;;  %972 = vmatprep.subr.mxu1 %v20_v0  ;;  %v67_v5 = vld [vmem:[%s1343_s1 + $0x88] sm:$0xff]  ;;  %v68_v7 = vld [vmem:[%s1343_s1 + $0x90] sm:$0xff] }
   0x3   :  { %v66_v2 = vld [vmem:[%s1343_s1 + $0x80] sm:$0xff]  ;;  %880 = vmatpush3.msra.mxu0 %v20_v0  ;;  %973 = vmatpush3.msra.mxu1 %v20_v0  ;;  %v53_v8 = vld [vmem:[%s1343_s1 + $0x18] sm:$0xff]  ;;  %v23_v13 = vld [vmem:[%s1344_s4 + $0x10] sm:$0xff] }
   0x4   :  { %881 = vmatprep.mubr.msk.f32.mxu0 %vm194_vm0, %v50_v1  ;;  %905 = vmatprep.mubr.msk.f32.mxu1 %vm194_vm0, %v66_v2  ;;  %v69_v9 = vld [vmem:[%s1343_s1 + $0x98] sm:$0xff]  ;;  %v21_v10 = vld [vmem:[%s1344_s4] sm:$0xff]  ;;  %v22_v14 = vld [vmem:[%s1344_s4 + $0x8] sm:$0xff] }
   0x5   :  { %882 = vmatmul.mubr.msk.f32.vlgmr.msra.gmra.mrb[0].mxu0 %vm194_vm0, %v51_v4  ;;  %906 = vmatmul.mubr.msk.f32.vlgmr.msra.gmra.mrb[0].mxu1 %vm194_vm0, %v67_v5  ;;  %v54_v11 = vld [vmem:[%s1343_s1 + $0x20] sm:$0xff]  ;;  %v24_v15 = vld [vmem:[%s1344_s4 + $0x18] sm:$0xff]  ;;  %v55_v16 = vld [vmem:[%s1343_s1 + $0x28] sm:$0xff] }
   0x6   :  { %884 = vmatprep.mubr.msk.f32.mxu0 %vm194_vm0, %v52_v6  ;;  %908 = vmatprep.mubr.msk.f32.mxu1 %vm194_vm0, %v68_v7  ;;  %v70_v12 = vld [vmem:[%s1343_s1 + $0xa0] sm:$0xff]  ;;  %v71_v17 = vld [vmem:[%s1343_s1 + $0xa8] sm:$0xff]  ;;  %v56_v18 = vld [vmem:[%s1343_s1 + $0x30] sm:$0xff] }
   0x7   :  { %76 = vperm.xlu0 %978, %v21_v10   ;;  %86 = vperm.xlu1 %979, %v23_v13   ;;  %v72_v19 = vld [vmem:[%s1343_s1 + $0xb0] sm:$0xff]  ;;  %v25_v20 = vld [vmem:[%s1344_s4 + $0x20] sm:$0xff]  ;;  %v26_v21 = vld [vmem:[%s1344_s4 + $0x28] sm:$0xff] }
   0x8   :  { %v57_v22 = vld [vmem:[%s1343_s1 + $0x38] sm:$0xff]  ;;  %v58_v24 = vld [vmem:[%s1343_s1 + $0x40] sm:$0xff]  ;;  %v27_v25 = vld [vmem:[%s1344_s4 + $0x30] sm:$0xff] }
   0x9   :  { %885 = vmatmul.mubr.msk.f32.gmra.mrb[2].mxu0 %vm194_vm0, %v53_v8  ;;  %909 = vmatmul.mubr.msk.f32.gmra.mrb[2].mxu1 %vm194_vm0, %v69_v9  ;;  %v73_v23 = vld [vmem:[%s1343_s1 + $0xb8] sm:$0xff]  ;;  %v59_v27 = vld [vmem:[%s1343_s1 + $0x48] sm:$0xff]  ;;  %v60_v28 = vld [vmem:[%s1343_s1 + $0x50] sm:$0xff] }
   0xa   :  { %887 = vmatprep.mubr.msk.f32.mxu0 %vm194_vm0, %v54_v11  ;;  %911 = vmatprep.mubr.msk.f32.mxu1 %vm194_vm0, %v70_v12  ;;  %v28_v26 = vld [vmem:[%s1344_s4 + $0x38] sm:$0xff]  ;;  %v29_v29 = vld [vmem:[%s1344_s4 + $0x40] sm:$0xff]  ;;  %v30_v30 = vld [vmem:[%s1344_s4 + $0x48] sm:$0xff] }
   0xb   :  { %81 = vperm.xlu0 %978, %v22_v14   ;;  %91 = vperm.xlu1 %979, %v24_v15   ;;  %v61_v31 = vld [vmem:[%s1343_s1 + $0x58] sm:$0xff]  ;;  %v62_v32 = vld [vmem:[%s1343_s1 + $0x60] sm:$0xff]  ;;  %v38_v34 = vld [vmem:[%s1344_s4 + $0x88] sm:$0xff] }
   0xc   :  { %v37_v33 = vld [vmem:[%s1344_s4 + $0x80] sm:$0xff]  ;;  %v63_v35 = vld [vmem:[%s1343_s1 + $0x68] sm:$0xff]  ;;  %v64_v36 = vld [vmem:[%s1343_s1 + $0x70] sm:$0xff] }
   0xd   :  { %888 = vmatmul.mubr.msk.f32.gmra.mrb[4].mxu0 %vm194_vm0, %v55_v16  ;;  %912 = vmatmul.mubr.msk.f32.gmra.mrb[4].mxu1 %vm194_vm0, %v71_v17  ;;  %v31_v37 = vld [vmem:[%s1344_s4 + $0x50] sm:$0xff]  ;;  %v32_v38 = vld [vmem:[%s1344_s4 + $0x58] sm:$0xff]  ;;  %v33_v42 = vld [vmem:[%s1344_s4 + $0x60] sm:$0xff] }
   0xe   :  { %890 = vmatprep.mubr.msk.f32.mxu0 %vm194_vm0, %v56_v18  ;;  %914 = vmatprep.mubr.msk.f32.mxu1 %vm194_vm0, %v72_v19  ;;  %v65_v39 = vld [vmem:[%s1343_s1 + $0x78] sm:$0xff]  ;;  %v39_v40 = vld [vmem:[%s1344_s4 + $0x90] sm:$0xff]  ;;  %v34_v43 = vld [vmem:[%s1344_s4 + $0x68] sm:$0xff] }
   0xf   :  { %96 = vperm.xlu0 %978, %v25_v20   ;;  %101 = vperm.xlu1 %979, %v26_v21   ;;  %v40_v41 = vld [vmem:[%s1344_s4 + $0x98] sm:$0xff]  ;;  %v41_v44 = vld [vmem:[%s1344_s4 + $0xa0] sm:$0xff]  ;;  %v42_v45 = vld [vmem:[%s1344_s4 + $0xa8] sm:$0xff] }
  0x10   :  { %v35_v46 = vld [vmem:[%s1344_s4 + $0x70] sm:$0xff]  ;;  %v36_v47 = vld [vmem:[%s1344_s4 + $0x78] sm:$0xff]  ;;  %v45_v50 = vld [vmem:[%s1344_s4 + $0xc0] sm:$0xff] }
  0x11   :  { %891 = vmatmul.mubr.msk.f32.gmra.mrb[6].mxu0 %vm194_vm0, %v57_v22  ;;  %915 = vmatmul.mubr.msk.f32.gmra.mrb[6].mxu1 %vm194_vm0, %v73_v23  ;;  %v43_v48 = vld [vmem:[%s1344_s4 + $0xb0] sm:$0xff]  ;;  %v44_v49 = vld [vmem:[%s1344_s4 + $0xb8] sm:$0xff]  ;;  %v46_v51 = vld [vmem:[%s1344_s4 + $0xc8] sm:$0xff] }
  0x12   :  { %893 = vmatprep.mubr.msk.f32.mxu0 %vm194_vm0, %v58_v24  ;;  %v47_v52 = vld [vmem:[%s1344_s4 + $0xd0] sm:$0xff]  ;;  %v48_v53 = vld [vmem:[%s1344_s4 + $0xd8] sm:$0xff]  ;;  %v49_v54 = vld [vmem:[%s1344_s4 + $0xe0] sm:$0xff] }
  0x13   :  { %106 = vperm.xlu0 %978, %v27_v25   ;;  %111 = vperm.xlu1 %979, %v28_v26   ;;  %v580_v57 = vld [vmem:[%s1345_s2] sm:$0xff] }
  0x14   :  { %933 = vmatprep.mubr.msk.f32.mxu1 %vm604_vm1, %v580_v57 }
  0x15   :  { %894 = vmatmul.mubr.msk.f32.gmra.mrb[8].mxu0 %vm194_vm0, %v59_v27 }
  0x16   :  { %896 = vmatprep.mubr.msk.f32.mxu0 %vm194_vm0, %v60_v28 }
  0x17   :  { %116 = vperm.xlu0 %978, %v29_v29   ;;  %121 = vperm.xlu1 %979, %v30_v30  }
  0x19   :  { %897 = vmatmul.mubr.msk.f32.gmra.mrb[10].mxu0 %vm194_vm0, %v61_v31 }
  0x1a   :  { %899 = vmatprep.mubr.msk.f32.mxu0 %vm194_vm0, %v62_v32 }
  0x1b   :  { %156 = vperm.xlu0 %978, %v37_v33   ;;  %161 = vperm.xlu1 %979, %v38_v34  }
  0x1d   :  { %900 = vmatmul.mubr.msk.f32.gmra.mrb[12].mxu0 %vm194_vm0, %v63_v35 }
  0x1e   :  { %902 = vmatprep.mubr.msk.f32.mxu0 %vm194_vm0, %v64_v36 }
  0x1f   :  { %126 = vperm.xlu0 %978, %v31_v37   ;;  %131 = vperm.xlu1 %979, %v32_v38  }
  0x21   :  { %903 = vmatmul.mubr.msk.f32.gmra.mrb[14].mxu0 %vm194_vm0, %v65_v39 }
  0x23   :  { %166 = vperm.xlu0 %978, %v39_v40   ;;  %171 = vperm.xlu1 %979, %v40_v41  }
  0x27   :  { %136 = vperm.xlu0 %978, %v33_v42   ;;  %141 = vperm.xlu1 %979, %v34_v43  }
  0x2b   :  { %176 = vperm.xlu0 %978, %v41_v44   ;;  %181 = vperm.xlu1 %979, %v42_v45  }
  0x2f   :  { %146 = vperm.xlu0 %978, %v35_v46   ;;  %151 = vperm.xlu1 %979, %v36_v47  }
  0x33   :  { %186 = vperm.xlu0 %978, %v43_v48   ;;  %191 = vperm.xlu1 %979, %v44_v49  }
  0x37   :  { %586 = vperm.xlu0 %978, %v45_v50   ;;  %591 = vperm.xlu1 %979, %v46_v51  }
  0x3b   :  { %596 = vperm.xlu0 %978, %v47_v52   ;;  %601 = vperm.xlu1 %979, %v48_v53  }
  0x3f   :  { %709 = vperm.xlu0 %978, %v49_v54  }
  0x86   :  { %v87_v55 = vpop.permute.xlu1 %86  ;;  %v77_v58 = vpop.permute.xlu0 %76 }
  0x8a   :  { %v92_v56 = vpop.permute.xlu1 %91  ;;  %v82_v60 = vpop.permute.xlu0 %81 }
  0x8e   :  { %v102_v59 = vpop.permute.xlu1 %101  ;;  %v97_v62 = vpop.permute.xlu0 %96 }
  0x92   :  { %v112_v61 = vpop.permute.xlu1 %111  ;;  %v107_v0 = vpop.permute.xlu0 %106 }
  0x96   :  { %v1300_v63 = vpop.permute.xlu1 %121  ;;  %v1302_v2 = vpop.permute.xlu0 %116 }
  0x9a   :  { %v162_v1 = vpop.permute.xlu1 %161  ;;  %v157_v4 = vpop.permute.xlu0 %156 }
  0x9e   :  { %v1304_v3 = vpop.permute.xlu1 %131  ;;  %v1306_v6 = vpop.permute.xlu0 %126 }
  0xa2   :  { %v172_v5 = vpop.permute.xlu1 %171  ;;  %v167_v8 = vpop.permute.xlu0 %166 }
  0xa6   :  { %v1308_v7 = vpop.permute.xlu1 %141  ;;  %v1310_v17 = vpop.permute.xlu0 %136 }
  0xaa   :  { %v182_v9 = vpop.permute.xlu1 %181  ;;  %v177_v38 = vpop.permute.xlu0 %176 }
  0xae   :  { %v1312_v18 = vpop.permute.xlu1 %151 }
  0xb2   :  { %v192_v40 = vpop.permute.xlu1 %191 }
  0xd8   :  { %v883_v10 = vpop.f32.mrb[0].mxu0  ;;  %v907_v11 = vpop.f32.mrb[0].mxu1 }
  0xd9   :  { %v339_v12 = vadd.f32 %v883_v10, %v82_v60  ;;  %v419_v13 = vadd.f32 %v907_v11, %v162_v1  ;;  %v333_v14 = vpop.f32.mrb[1].mxu0  ;;  %v413_v15 = vpop.f32.mrb[1].mxu1 }
  0xda   :  { %v334_v16 = vadd.f32 %v333_v14, %v77_v58  ;;  %v414_v20 = vadd.f32 %v413_v15, %v157_v4 }
  0xdb   :  { %v817_v19 = vmul.f32 -1.442695, %v339_v12  ;;  %980 = vtanh.f32 %v419_v13 }
  0xdc   :  { %v816_v21 = vmul.f32 -1.442695, %v334_v16  ;;  %v886_v22 = vpop.f32.mrb[2].mxu0  ;;  %v910_v23 = vpop.f32.mrb[2].mxu1 }
  0xdd   :  { %982 = vpow2.f32 %v817_v19  ;;  %v349_v24 = vadd.f32 %v886_v22, %v92_v56  ;;  %v429_v25 = vadd.f32 %v910_v23, %v172_v5  ;;  %v343_v26 = vpop.f32.mrb[3].mxu0  ;;  %v423_v27 = vpop.f32.mrb[3].mxu1 }
  0xde   :  { %984 = vpow2.f32 %v816_v21  ;;  %v344_v28 = vadd.f32 %v343_v26, %v87_v55  ;;  %v424_v30 = vadd.f32 %v423_v27, %v167_v8  ;;  %v1316_v8 = vpop.permute.xlu0 %146 }
  0xdf   :  { %986 = vtanh.f32 %v414_v20  ;;  %v819_v29 = vmul.f32 -1.442695, %v349_v24 }
  0xe0   :  { %988 = vtanh.f32 %v429_v25  ;;  %v818_v31 = vmul.f32 -1.442695, %v344_v28  ;;  %v889_v32 = vpop.f32.mrb[4].mxu0  ;;  %v913_v33 = vpop.f32.mrb[4].mxu1 }
  0xe1   :  { %990 = vpow2.f32 %v819_v29  ;;  %v359_v34 = vadd.f32 %v889_v32, %v102_v59  ;;  %v439_v35 = vadd.f32 %v913_v33, %v182_v9  ;;  %v353_v36 = vpop.f32.mrb[5].mxu0  ;;  %v433_v37 = vpop.f32.mrb[5].mxu1 }
  0xe2   :  { %992 = vpow2.f32 %v818_v31  ;;  %v354_v39 = vadd.f32 %v353_v36, %v97_v62  ;;  %v434_v42 = vadd.f32 %v433_v37, %v177_v38  ;;  %v187_v28 = vpop.permute.xlu0 %186 }
  0xe3   :  { %994 = vtanh.f32 %v424_v30  ;;  %v821_v41 = vmul.f32 -1.442695, %v359_v34 }
  0xe4   :  { %996 = vtanh.f32 %v439_v35  ;;  %v820_v43 = vmul.f32 -1.442695, %v354_v39  ;;  %v892_v44 = vpop.f32.mrb[6].mxu0  ;;  %v916_v45 = vpop.f32.mrb[6].mxu1 }
  0xe5   :  { %998 = vpow2.f32 %v821_v41  ;;  %v369_v46 = vadd.f32 %v892_v44, %v112_v61  ;;  %v449_v47 = vadd.f32 %v916_v45, %v192_v40  ;;  %v363_v48 = vpop.f32.mrb[7].mxu0  ;;  %v443_v49 = vpop.f32.mrb[7].mxu1 }
  0xe6   :  { %v981_v50 = vpop.eup %980  ;;  %1000 = vpow2.f32 %v820_v43  ;;  %v364_v51 = vadd.f32 %v363_v48, %v107_v0 }
  0xe7   :  { %v983_v52 = vpop.eup %982  ;;  %1002 = vtanh.f32 %v434_v42  ;;  %v823_v53 = vmul.f32 -1.442695, %v369_v46 }
  0xe8   :  { %v985_v54 = vpop.eup %984  ;;  %v477_v55 = vadd.f32 1.0, %v983_v52  ;;  %1004 = vtanh.f32 %v449_v47  ;;  %v822_v56 = vmul.f32 -1.442695, %v364_v51  ;;  %v895_v57 = vpop.f32.mrb[8].mxu0 }
  0xe9   :  { %v987_v58 = vpop.eup %986  ;;  %v476_v59 = vadd.f32 1.0, %v985_v54  ;;  %1006 = vpow2.f32 %v823_v53  ;;  %v379_v60 = vadd.f32 %v895_v57, %v1300_v63  ;;  %v373_v61 = vpop.f32.mrb[9].mxu0 }
  0xea   :  { %v989_v62 = vpop.eup %988  ;;  %1008 = vrcp.f32 %v477_v55  ;;  %v374_v1 = vadd.f32 %v373_v61, %v1302_v2 }
  0xeb   :  { %v991_v4 = vpop.eup %990  ;;  %1010 = vrcp.f32 %v476_v59  ;;  %v825_v0 = vmul.f32 -1.442695, %v379_v60 }
  0xec   :  { %v993_v5 = vpop.eup %992  ;;  %v479_v9 = vadd.f32 1.0, %v991_v4  ;;  %1012 = vpow2.f32 %v822_v56  ;;  %v824_v10 = vmul.f32 -1.442695, %v374_v1  ;;  %v898_v11 = vpop.f32.mrb[10].mxu0 }
  0xed   :  { %v995_v12 = vpop.eup %994  ;;  %v478_v13 = vadd.f32 1.0, %v993_v5  ;;  %1014 = vpow2.f32 %v825_v0  ;;  %v389_v63 = vadd.f32 %v898_v11, %v1304_v3  ;;  %v383_v14 = vpop.f32.mrb[11].mxu0 }
  0xee   :  { %v997_v15 = vpop.eup %996  ;;  %1016 = vrcp.f32 %v479_v9  ;;  %v384_v2 = vadd.f32 %v383_v14, %v1306_v6  ;;  %v444_v6 = vadd.f32 %v443_v49, %v187_v28 }
  0xef   :  { %v999_v16 = vpop.eup %998  ;;  %1018 = vrcp.f32 %v478_v13  ;;  %v827_v19 = vmul.f32 -1.442695, %v389_v63 }
  0xf0   :  { %v1001_v20 = vpop.eup %1000  ;;  %v481_v21 = vadd.f32 1.0, %v999_v16  ;;  %1020 = vpow2.f32 %v824_v10  ;;  %v826_v22 = vmul.f32 -1.442695, %v384_v2  ;;  %v901_v23 = vpop.f32.mrb[12].mxu0 }
  0xf1   :  { %v1003_v24 = vpop.eup %1002  ;;  %v480_v25 = vadd.f32 1.0, %v1001_v20  ;;  %1022 = vpow2.f32 %v827_v19  ;;  %v399_v26 = vadd.f32 %v901_v23, %v1308_v7  ;;  %v393_v27 = vpop.f32.mrb[13].mxu0 }
  0xf2   :  { %v1005_v3 = vpop.eup %1004  ;;  %1024 = vrcp.f32 %v481_v21 }
  0xf3   :  { %v1007_v29 = vpop.eup %1006  ;;  %1026 = vrcp.f32 %v480_v25  ;;  %v829_v30 = vmul.f32 -1.442695, %v399_v26 }
  0xf4   :  { %v1009_v31 = vpop.eup %1008  ;;  %v483_v32 = vadd.f32 1.0, %v1007_v29  ;;  %1028 = vpow2.f32 %v826_v22  ;;  %v904_v33 = vpop.f32.mrb[14].mxu0 }
  0xf5   :  { %v1011_v34 = vpop.eup %1010  ;;  %v557_v35 = vmul.f32 %v1009_v31, %v981_v50  ;;  %1030 = vpow2.f32 %v829_v30  ;;  %v403_v36 = vpop.f32.mrb[15].mxu0  ;;  %v394_v50 = vadd.f32 %v393_v27, %v1310_v17  ;;  %v409_v53 = vadd.f32 %v904_v33, %v1312_v18 }
  0xf6   :  { %v1013_v37 = vpop.eup %1012  ;;  %v556_v38 = vmul.f32 %v1011_v34, %v987_v58  ;;  %1032 = vrcp.f32 %v483_v32  ;;  %v404_v58 = vadd.f32 %v403_v36, %v1316_v8 }
  0xf7   :  { %v1015_v7 = vpop.eup %1014  ;;  %v482_v39 = vadd.f32 1.0, %v1013_v37  ;;  %1034 = vtanh.f32 %v444_v6  ;;  %v828_v61 = vmul.f32 -1.442695, %v394_v50  ;;  %v831_v17 = vmul.f32 -1.442695, %v409_v53 }
  0xf8   :  { %v1017_v40 = vpop.eup %1016  ;;  %1036 = vtanh.f32 %v557_v35  ;;  %v525_v41 = vadd.f32 1.0, %v1015_v7  ;;  %v830_v18 = vmul.f32 -1.442695, %v404_v58  ;;  %v581_v7 = vld [vmem:[%s1345_s2 + $0x8] sm:$0xff] }
  0xf9   :  { %v1019_v42 = vpop.eup %1018  ;;  %v559_v43 = vmul.f32 %v1017_v40, %v989_v62  ;;  %1038 = vrcp.f32 %v482_v39  ;;  %v582_v39 = vld [vmem:[%s1345_s2 + $0x10] sm:$0xff]  ;;  %v583_v40 = vld [vmem:[%s1345_s2 + $0x18] sm:$0xff] }
  0xfa   :  { %v1021_v44 = vpop.eup %1020  ;;  %v558_v45 = vmul.f32 %v1019_v42, %v995_v12  ;;  %1040 = vrcp.f32 %v525_v41  ;;  %v1077_v41 = vmov 0.0|0.0   ;;  %v1079_v42 = vmov 0.0  }
  0xfb   :  { %v1023_v46 = vpop.eup %1022  ;;  %1042 = vtanh.f32 %v556_v38  ;;  %v524_v47 = vadd.f32 1.0, %v1021_v44  ;;  %v587_v44 = vpop.permute.xlu0 %586 }
  0xfc   :  { %v1025_v48 = vpop.eup %1024  ;;  %1044 = vtanh.f32 %v559_v43  ;;  %v527_v49 = vadd.f32 1.0, %v1023_v46  ;;  %v592_v43 = vpop.permute.xlu1 %591 }
  0xfd   :  { %v1027_v51 = vpop.eup %1026  ;;  %v561_v52 = vmul.f32 %v1025_v48, %v997_v15  ;;  %1046 = vrcp.f32 %v524_v47 }
  0xfe   :  { %v1029_v54 = vpop.eup %1028  ;;  %v560_v55 = vmul.f32 %v1027_v51, %v1003_v24  ;;  %1048 = vrcp.f32 %v527_v49 }
  0xff   :  { %v1031_v56 = vpop.eup %1030  ;;  %1050 = vtanh.f32 %v558_v45  ;;  %v526_v57 = vadd.f32 1.0, %v1029_v54  ;;  %v597_v53 = vpop.permute.xlu0 %596 }
 0x100   :  { %v1033_v59 = vpop.eup %1032  ;;  %1052 = vtanh.f32 %v561_v52  ;;  %v529_v60 = vadd.f32 1.0, %v1031_v56  ;;  %v602_v50 = vpop.permute.xlu1 %601 }
 0x101   :  { %v1035_v62 = vpop.eup %1034  ;;  %v563_v1 = vmul.f32 %v1033_v59, %v1005_v3  ;;  %1054 = vrcp.f32 %v526_v57 }
 0x102   :  { %v1037_v4 = vpop.eup %1036  ;;  %1056 = vrcp.f32 %v529_v60 }
 0x103   :  { %v1039_v0 = vpop.eup %1038  ;;  %1058 = vpow2.f32 %v828_v61  ;;  %v706_v61 = vld [vmem:[%s1346_s3] sm:$0xff] }
 0x104   :  { %v1041_v5 = vpop.eup %1040  ;;  %v562_v9 = vmul.f32 %v1039_v0, %v1035_v62  ;;  %1060 = vpow2.f32 %v831_v17  ;;  %v710_v62 = vpop.permute.xlu0 %709 }
 0x105   :  { %v1043_v10 = vpop.eup %1042  ;;  %v573_v11 = vmul.f32 %v1041_v5, %v1037_v4  ;;  %1062 = vpow2.f32 %v830_v18 }
 0x106   :  { %v1045_v12 = vpop.eup %1044  ;;  %1064 = vtanh.f32 %v560_v55 }
 0x107   :  { %v1047_v8 = vpop.eup %1046  ;;  %1066 = vtanh.f32 %v563_v1 }
 0x108   :  { %v1049_v13 = vpop.eup %1048  ;;  %v572_v63 = vmul.f32 %v1047_v8, %v1043_v10 }
 0x109   :  { %v1051_v14 = vpop.eup %1050  ;;  %v575_v15 = vmul.f32 %v1049_v13, %v1045_v12 }
 0x10a   :  { %v1053_v2 = vpop.eup %1052  ;;  %v950_v16 = vpack.c.bf16 %v573_v11, %v572_v63 }
 0x10b   :  { %v1055_v19 = vpop.eup %1054 }
 0x10c   :  { %v1057_v20 = vpop.eup %1056  ;;  %951 = vmatprep.subr.bf16.mxu1 %v950_v16  ;;  %v574_v21 = vmul.f32 %v1055_v19, %v1051_v14 }
 0x10d   :  { %953 = vmatpush3.bf16.msra.mxu1 %v950_v16  ;;  %v577_v22 = vmul.f32 %v1057_v20, %v1053_v2  ;;  %v1059_v23 = vpop.eup %1058 }
 0x10e   :  { %v954_v24 = vpack.c.bf16 %v575_v15, %v574_v21  ;;  %v1061_v25 = vpop.eup %1060  ;;  %v528_v26 = vadd.f32 1.0, %v1059_v23 }
 0x10f   :  { %v531_v27 = vadd.f32 1.0, %v1061_v25  ;;  %v1063_v3 = vpop.eup %1062 }
 0x110   :  { %955 = vmatprep.subr.bf16.mxu1 %v954_v24  ;;  %1068 = vrcp.f32 %v528_v26  ;;  %v530_v28 = vadd.f32 1.0, %v1063_v3  ;;  %v1065_v29 = vpop.eup %1064 }
 0x111   :  { %957 = vmatpush3.bf16.msra.mxu1 %v954_v24  ;;  %1070 = vrcp.f32 %v531_v27  ;;  %v1067_v6 = vpop.eup %1066 }
 0x112   :  { %1072 = vtanh.f32 %v562_v9 }
 0x113   :  { %1074 = vrcp.f32 %v530_v28 }
 0x11a   :  { %v1069_v30 = vpop.eup %1068 }
 0x11b   :  { %v1071_v31 = vpop.eup %1070  ;;  %v576_v32 = vmul.f32 %v1069_v30, %v1065_v29 }
 0x11c   :  { %v1073_v33 = vpop.eup %1072  ;;  %v579_v34 = vmul.f32 %v1071_v31, %v1067_v6 }
 0x11d   :  { %v1075_v35 = vpop.eup %1074  ;;  %v958_v36 = vpack.c.bf16 %v577_v22, %v576_v32 }
 0x11e   :  { %v578_v37 = vmul.f32 %v1075_v35, %v1073_v33 }
 0x11f   :  { %959 = vmatprep.subr.bf16.mxu1 %v958_v36 }
 0x120   :  { %961 = vmatpush3.bf16.msra.mxu1 %v958_v36  ;;  %v962_v38 = vpack.c.bf16 %v579_v34, %v578_v37 }
 0x122   :  { %963 = vmatprep.subr.bf16.mxu1 %v962_v38 }
 0x124   :  { %965 = vmatpush3.bf16.msra.mxu1 %v962_v38 }
 0x125   :  { %966 = vmatprep.subr.bf16.mxu1 %v1077_v41 }
 0x127   :  { %934 = vmatmul.mubr.msk.f32.vlgmr.msra.gmra.mrb[8].mxu1 %vm604_vm1, %v581_v7 }
 0x128   :  { %936 = vmatprep.mubr.msk.f32.mxu1 %vm604_vm1, %v582_v39 }
 0x12b   :  { %937 = vmatmul.mubr.msk.f32.gmra.mrb[10].mxu1 %vm604_vm1, %v583_v40 }
 0x12c   :  { %947 = vmatprep.mubr.msk.f32.mxu1 %vm1078_vm2, %v1079_v42 }
 0x1fa   :  { %v935_v45 = vpop.f32.mrb[8].mxu1 }
 0x1fb   :  { %v689_v46 = vadd.f32 %v935_v45, %v592_v43  ;;  %v683_v47 = vpop.f32.mrb[9].mxu1 }
 0x1fc   :  { %v684_v48 = vadd.f32 %v683_v47, %v587_v44 }
 0x1fd   :  { %v703_v49 = vmax.f32 %v689_v46, 0.0 }
 0x1fe   :  { %v702_v51 = vmax.f32 %v684_v48, 0.0  ;;  %v938_v52 = vpop.f32.mrb[10].mxu1 }
 0x1ff   :  { %v699_v54 = vadd.f32 %v938_v52, %v602_v50  ;;  %v693_v55 = vpop.f32.mrb[11].mxu1 }
 0x200   :  { %v967_v56 = vpack.c.bf16 %v703_v49, %v702_v51  ;;  %v694_v57 = vadd.f32 %v693_v55, %v597_v53 }
 0x201   :  { %v705_v58 = vmax.f32 %v699_v54, 0.0 }
 0x202   :  { %v704_v59 = vmax.f32 %v694_v57, 0.0  ;;  %968 = vmatpush3.bf16.msra.mxu1 %v967_v56 }
 0x203   :  { %969 = vmatprep.subr.bf16.mxu1 %v1077_v41 }
 0x204   :  { %v970_v60 = vpack.c.bf16 %v705_v58, %v704_v59 }
 0x206   :  { %971 = vmatpush3.bf16.msra.mxu1 %v970_v60 }
 0x209   :  { %948 = vmatmul.mubr.msk.f32.vlgmr.msra.gmra.mrb[12].mxu1 %vm712_vm3, %v706_v61 }
 0x2dc   :  { %v782_v1 = vpop.f32.mrb[12].mxu1 }
 0x2dd   :  { %v783_v17 = vadd.f32 %v782_v1, %v710_v62  ;;  %v949_v4 = vpop.f32.mrb[13].mxu1 }
 0x2df   :  { %787 = vst.msk [vmem:[%s1347_s5] sm:$0xff] %vm786_vm4, %v783_v17 }

</bundles_post_ra>
